<compile_context>
chip_gen: v6e
topology: v6e:2x2x1
jax: 0.10.0
libtpu: 0.0.40
codegen_flags: <defaults>
</compile_context>

<pallas_src>
import functools

import jax
import jax.numpy as jnp
from jax.experimental import pallas as pl
from jax.experimental.pallas import tpu as pltpu


def _link_pred_kernel(num_hidden, lane_reduce_out, xi_ref, xj_ref, *refs):
    """Fused: elementwise product -> (Linear + ReLU)* -> Linear -> sigmoid.

    xi_ref / xj_ref are feature-major [in_ch, block_n] tiles, so the batch
    lives on the 128-lane axis for every intermediate and the output store.
    """
    o_ref = refs[-1]
    params = refs[:-1]  # w0, b0, w1, b1, ..., w_last, b_last

    # Elementwise product in f32 on the VPU (v5e has no bf16 VALU path).
    x = xi_ref[...].astype(jnp.float32) * xj_ref[...].astype(jnp.float32)

    # Hidden layers: h = relu(W_l @ h + b_l); activations stay [h_l, block_n].
    h = x
    for l in range(num_hidden):
        w = params[2 * l][...]                 # [h_l, h_{l-1}]  (matmul dtype)
        b = params[2 * l + 1][...]             # [h_l, 1]        (f32)
        h = jnp.dot(w, h.astype(w.dtype), preferred_element_type=jnp.float32)
        h = jnp.maximum(h + b, 0.0)
        # TODO(synk): F.dropout omitted — module evaluated in inference mode
        # (training=False) where dropout is the identity.

    w_last = params[2 * num_hidden][...]
    b_last = params[2 * num_hidden + 1][...]
    if lane_reduce_out:
        # out_channels == 1: skip the 1-column MXU matmul.  VPU broadcast-
        # multiply + sublane (axis 0) reduce -> lane-dense [1, block_n].
        y = jnp.sum(h * w_last, axis=0, keepdims=True) + b_last
    else:
        # General out_channels: [out, h_last] @ [h_last, block_n], lane-dense.
        y = jnp.dot(w_last, h.astype(w_last.dtype),
                    preferred_element_type=jnp.float32) + b_last

    o_ref[...] = jax.nn.sigmoid(y).astype(o_ref.dtype)


def link_predictor_forward(x_i, x_j, weights, biases, *, block_n=None,
                           matmul_dtype=jnp.bfloat16, input_dtype=None,
                           inputs_feature_major=False, vmem_limit_bytes=None):
    """LinkPredictor forward.

    x_i / x_j: [N, in_channels] (PyTorch layout) or, with
      inputs_feature_major=True, already [in_channels, N] (preferred: the
      producer hands over lane-dense, ideally bf16, tiles and this wrapper
      adds no extra HBM pass).
    weights[l]: nn.Linear layout [out_l, in_l]; biases[l]: [out_l].
    Returns [N, out_channels] float32 probabilities.
    """
    assert len(weights) == len(biases) and len(weights) >= 2
    num_layers = len(weights)
    num_hidden = num_layers - 1
    in_ch = weights[0].shape[1]
    out_ch = weights[-1].shape[0]
    lane_reduce_out = (out_ch == 1)

    if input_dtype is None:
        input_dtype = matmul_dtype

    # --- Input layout / dtype prep (HBM-traffic critical).
    if inputs_feature_major:
        assert x_i.shape[0] == in_ch and x_j.shape == x_i.shape
        x_i_fm = x_i.astype(input_dtype)   # no-op if producer already matches
        x_j_fm = x_j.astype(input_dtype)
    else:
        assert x_i.shape[1] == in_ch and x_j.shape == x_i.shape
        # TODO(synk): this transpose+cast is one extra HBM pass; in production
        # the producer should emit feature-major bf16 directly
        # (inputs_feature_major=True path above).
        x_i_fm = x_i.T.astype(input_dtype)
        x_j_fm = x_j.T.astype(input_dtype)
    N = x_i_fm.shape[1]

    def _round_up(v, m):
        return ((v + m - 1) // m) * m

    # --- Row tile selection: biggest lane-aligned tile within a conservative
    #     VMEM budget (fits v5e's 16 MiB scoped default; raise vmem_limit_bytes
    #     to go larger), capped at 32K rows, and keeping >= 2 grid tiles so
    #     v7x's two TensorCores both get a share of the "parallel" grid axis.
    if block_n is None:
        budget = int((vmem_limit_bytes or (16 << 20)) * 0.75)
        in_itemsize = jnp.dtype(input_dtype).itemsize
        max_h = max([w.shape[0] for w in weights] + [in_ch])
        per_row = (2 * 2 * in_ch * in_itemsize   # x_i / x_j, double-buffered
                   + 4 * (in_ch + max_h)         # f32 product + widest activation
                   + 2 * 4 * out_ch)             # output tile, double-buffered
        cap_rows = max(128, (budget // per_row) // 128 * 128)
        block_n = max(128, min(cap_rows, 32768, _round_up(pl.cdiv(N, 2), 128)))
    else:
        block_n = max(128, _round_up(int(block_n), 128))

    grid = (pl.cdiv(N, block_n),)   # ragged final tile handled by Pallas

    # --- Parameter prep (done ONCE here, not per grid step inside the kernel):
    #     hidden weights cast to bf16 for the MXU, biases as f32 column vectors.
    params = []
    in_specs = [
        pl.BlockSpec((in_ch, block_n), lambda i: (0, i)),
        pl.BlockSpec((in_ch, block_n), lambda i: (0, i)),
    ]
    for l in range(num_hidden):
        w = weights[l].astype(matmul_dtype)                  # [out_l, in_l]
        b = biases[l].astype(jnp.float32).reshape(-1, 1)     # [out_l, 1]
        in_specs.append(pl.BlockSpec(w.shape, lambda i: (0, 0)))
        in_specs.append(pl.BlockSpec(b.shape, lambda i: (0, 0)))
        params += [w, b]

    if lane_reduce_out:
        # Column vector, kept f32 (VPU sublane-reduce path; v5e has no bf16 VPU).
        w_last = weights[-1].astype(jnp.float32).reshape(-1, 1)  # [h_last, 1]
    else:
        w_last = weights[-1].astype(matmul_dtype)                # [out, h_last]
    b_last = biases[-1].astype(jnp.float32).reshape(-1, 1)       # [out, 1]
    in_specs.append(pl.BlockSpec(w_last.shape, lambda i: (0, 0)))
    in_specs.append(pl.BlockSpec(b_last.shape, lambda i: (0, 0)))
    params += [w_last, b_last]

    # Lane-dense output [out_ch, N]; OOB columns of the final partial tile are
    # masked on store, so no input padding or output slicing is needed.
    out_shape = jax.ShapeDtypeStruct((out_ch, N), jnp.float32)
    out_spec = pl.BlockSpec((out_ch, block_n), lambda i: (0, i))

    out = pl.pallas_call(
        functools.partial(_link_pred_kernel, num_hidden, lane_reduce_out),
        out_shape=out_shape,
        grid=grid,
        in_specs=in_specs,
        out_specs=out_spec,
        compiler_params=pltpu.CompilerParams(
            dimension_semantics=("parallel",),
            vmem_limit_bytes=vmem_limit_bytes,
        ),
    )(x_i_fm, x_j_fm, *params)

    # [out_ch, N] -> [N, out_ch]; trivial reshape when out_ch == 1.
    return out.T


def init_params(key, in_channels, hidden_channels, out_channels, num_layers):
    """Deterministic init mirroring nn.Linear (weights stored [out, in])."""
    dims = [in_channels] + [hidden_channels] * (num_layers - 1) + [out_channels]
    weights, biases = [], []
    for l in range(num_layers):
        key, kw, kb = jax.random.split(key, 3)
        fan_in = dims[l]
        bound = 1.0 / jnp.sqrt(fan_in)
        w = jax.random.uniform(kw, (dims[l + 1], dims[l]), jnp.float32,
                               -bound, bound)
        b = jax.random.uniform(kb, (dims[l + 1],), jnp.float32, -bound, bound)
        weights.append(w)
        biases.append(b)
    return weights, biases


def reference_forward(x_i, x_j, weights, biases):
    x = (x_i * x_j).astype(jnp.float32)
    for l, (w, b) in enumerate(zip(weights, biases)):
        x = x @ w.T + b
        if l < len(weights) - 1:
            x = jnp.maximum(x, 0.0)
    return jax.nn.sigmoid(x)


if __name__ == "__main__":
    # Small shapes consistent with the module's forward; N chosen so the grid
    # has 2 tiles with a ragged final tile (1000 = 512 + 488 valid rows),
    # exercising the OOB-write masking that replaced the old jnp.pad copy.
    N = 1000
    in_channels = 16
    hidden_channels = 32
    out_channels = 1
    num_layers = 3
    dropout = 0.5      # unused at inference

    key = jax.random.PRNGKey(0)
    key, k_i, k_j = jax.random.split(key, 3)
    x_i = jax.random.normal(k_i, (N, in_channels), jnp.float32)
    x_j = jax.random.normal(k_j, (N, in_channels), jnp.float32)

    weights, biases = init_params(key, in_channels, hidden_channels,
                                  out_channels, num_layers)
    ref = reference_forward(x_i, x_j, weights, biases)

    # Exact-path check (f32 inputs, f32 MXU operands) vs pure-JAX reference.
    out_f32 = link_predictor_forward(x_i, x_j, weights, biases,
                                     matmul_dtype=jnp.float32)
    out_f32 = jax.block_until_ready(out_f32)
    assert out_f32.shape == (N, out_channels)
    assert jnp.allclose(out_f32, ref, atol=1e-5, rtol=1e-5), \
        "f32 kernel mismatch vs reference"

    # Fast path: producer-style feature-major bf16 inputs ([in_ch, N]) — no
    # wrapper transpose/pad/cast passes, bf16 MXU with f32 accumulation.
    x_i_fm = x_i.T.astype(jnp.bfloat16)
    x_j_fm = x_j.T.astype(jnp.bfloat16)
    out_bf16 = link_predictor_forward(x_i_fm, x_j_fm, weights, biases,
                                      inputs_feature_major=True)
    out_bf16 = jax.block_until_ready(out_bf16)
    assert out_bf16.shape == (N, out_channels)
    assert jnp.allclose(out_bf16, ref, atol=5e-2, rtol=5e-2), \
        "bf16 kernel drifted too far from reference"

    print("KERNEL_OK")
</pallas_src>

<mosaic_0001>
module attributes {stable_mosaic.version = 11 : i64} {
  func.func @_link_pred_kernel(%arg0: i32, %arg1: memref<16x512xf32, #tpu.memory_space<vmem>>, %arg2: memref<16x512xf32, #tpu.memory_space<vmem>>, %arg3: memref<32x16xf32, #tpu.memory_space<vmem>>, %arg4: memref<32x1xf32, #tpu.memory_space<vmem>>, %arg5: memref<32x32xf32, #tpu.memory_space<vmem>>, %arg6: memref<32x1xf32, #tpu.memory_space<vmem>>, %arg7: memref<32x1xf32, #tpu.memory_space<vmem>>, %arg8: memref<1x1xf32, #tpu.memory_space<vmem>>, %arg9: memref<1x512xf32, #tpu.memory_space<vmem>>) attributes {dimension_semantics = [#tpu.dimension_semantics<parallel>], iteration_bounds = array<i64: 2>, scalar_prefetch = 0 : i64, scratch_operands = 0 : i64, tpu.core_type = #tpu.core_type<tc>, window_params = [{transform_indices = @transform_0, window_bounds = array<i64: 16, 512>}, {transform_indices = @transform_1, window_bounds = array<i64: 16, 512>}, {pipeline_mode = #tpu.pipeline_mode<synchronous>, transform_indices = @transform_2, window_bounds = array<i64: 32, 16>}, {pipeline_mode = #tpu.pipeline_mode<synchronous>, transform_indices = @transform_3, window_bounds = array<i64: 32, 1>}, {pipeline_mode = #tpu.pipeline_mode<synchronous>, transform_indices = @transform_4, window_bounds = array<i64: 32, 32>}, {pipeline_mode = #tpu.pipeline_mode<synchronous>, transform_indices = @transform_5, window_bounds = array<i64: 32, 1>}, {pipeline_mode = #tpu.pipeline_mode<synchronous>, transform_indices = @transform_6, window_bounds = array<i64: 32, 1>}, {pipeline_mode = #tpu.pipeline_mode<synchronous>, transform_indices = @transform_7, window_bounds = array<i64: 1, 1>}, {transform_indices = @transform_8, window_bounds = array<i64: 1, 512>}]} {
    %c0 = arith.constant 0 : index
    %c0_0 = arith.constant 0 : index
    %0 = vector.load %arg1[%c0, %c0_0] : memref<16x512xf32, #tpu.memory_space<vmem>>, vector<16x512xf32>
    %c0_1 = arith.constant 0 : index
    %c0_2 = arith.constant 0 : index
    %1 = vector.load %arg2[%c0_1, %c0_2] : memref<16x512xf32, #tpu.memory_space<vmem>>, vector<16x512xf32>
    %2 = arith.mulf %0, %1 : vector<16x512xf32>
    %c0_3 = arith.constant 0 : index
    %c0_4 = arith.constant 0 : index
    %3 = vector.load %arg3[%c0_3, %c0_4] : memref<32x16xf32, #tpu.memory_space<vmem>>, vector<32x16xf32>
    %c0_5 = arith.constant 0 : index
    %c0_6 = arith.constant 0 : index
    %4 = vector.load %arg4[%c0_5, %c0_6] : memref<32x1xf32, #tpu.memory_space<vmem>>, vector<32x1xf32>
    %cst = arith.constant dense<0.000000e+00> : vector<32x512xf32>
    %5 = tpu.matmul %3, %2, %cst {dimension_numbers = #tpu.dot_dimension_numbers<[1], [0], [0], [1], [0, 0, 1, 1], [], []>} : vector<32x16xf32>, vector<16x512xf32>, vector<32x512xf32> -> vector<32x512xf32>
    %6 = vector.broadcast %4 : vector<32x1xf32> to vector<32x512xf32>
    %7 = arith.addf %5, %6 : vector<32x512xf32>
    %cst_7 = arith.constant 0.000000e+00 : f32
    %8 = vector.broadcast %cst_7 : f32 to vector<32x512xf32>
    %9 = arith.maximumf %7, %8 : vector<32x512xf32>
    %c0_8 = arith.constant 0 : index
    %c0_9 = arith.constant 0 : index
    %10 = vector.load %arg5[%c0_8, %c0_9] : memref<32x32xf32, #tpu.memory_space<vmem>>, vector<32x32xf32>
    %c0_10 = arith.constant 0 : index
    %c0_11 = arith.constant 0 : index
    %11 = vector.load %arg6[%c0_10, %c0_11] : memref<32x1xf32, #tpu.memory_space<vmem>>, vector<32x1xf32>
    %cst_12 = arith.constant dense<0.000000e+00> : vector<32x512xf32>
    %12 = tpu.matmul %10, %9, %cst_12 {dimension_numbers = #tpu.dot_dimension_numbers<[1], [0], [0], [1], [0, 0, 1, 1], [], []>} : vector<32x32xf32>, vector<32x512xf32>, vector<32x512xf32> -> vector<32x512xf32>
    %13 = vector.broadcast %11 : vector<32x1xf32> to vector<32x512xf32>
    %14 = arith.addf %12, %13 : vector<32x512xf32>
    %cst_13 = arith.constant 0.000000e+00 : f32
    %15 = vector.broadcast %cst_13 : f32 to vector<32x512xf32>
    %16 = arith.maximumf %14, %15 : vector<32x512xf32>
    %c0_14 = arith.constant 0 : index
    %c0_15 = arith.constant 0 : index
    %17 = vector.load %arg7[%c0_14, %c0_15] : memref<32x1xf32, #tpu.memory_space<vmem>>, vector<32x1xf32>
    %c0_16 = arith.constant 0 : index
    %c0_17 = arith.constant 0 : index
    %18 = vector.load %arg8[%c0_16, %c0_17] : memref<1x1xf32, #tpu.memory_space<vmem>>, vector<1x1xf32>
    %19 = vector.broadcast %17 : vector<32x1xf32> to vector<32x512xf32>
    %20 = arith.mulf %16, %19 : vector<32x512xf32>
    %cst_18 = arith.constant dense<0.000000e+00> : vector<512xf32>
    %21 = vector.multi_reduction <add>, %20, %cst_18 [0] : vector<32x512xf32> to vector<512xf32>
    %22 = vector.shape_cast %21 : vector<512xf32> to vector<1x512xf32>
    %23 = vector.broadcast %18 : vector<1x1xf32> to vector<1x512xf32>
    %24 = arith.addf %22, %23 : vector<1x512xf32>
    %25 = arith.negf %24 : vector<1x512xf32>
    %26 = math.exp %25 : vector<1x512xf32>
    %cst_19 = arith.constant 1.000000e+00 : f32
    %27 = vector.broadcast %cst_19 : f32 to vector<1x512xf32>
    %28 = arith.addf %27, %26 : vector<1x512xf32>
    %29 = arith.divf %27, %28 : vector<1x512xf32>
    %c0_20 = arith.constant 0 : index
    %c0_21 = arith.constant 0 : index
    %30 = vector.load %arg9[%c0_20, %c0_21] : memref<1x512xf32, #tpu.memory_space<vmem>>, vector<1x512xf32>
    tpu.vector_store %arg9[%c0_20, %c0_21], %29 {strides = array<i32>} : memref<1x512xf32, #tpu.memory_space<vmem>>, vector<1x512xf32>,
    return
  }
  func.func @transform_0(%arg0: i32) -> (i32, i32) {
    %c0_i32 = arith.constant 0 : i32
    %c0_i32_0 = arith.constant 0 : i32
    return %c0_i32, %arg0 : i32, i32
  }
  func.func @transform_1(%arg0: i32) -> (i32, i32) {
    %c0_i32 = arith.constant 0 : i32
    %c0_i32_0 = arith.constant 0 : i32
    return %c0_i32, %arg0 : i32, i32
  }
  func.func @transform_2(%arg0: i32) -> (i32, i32) {
    %c0_i32 = arith.constant 0 : i32
    %c0_i32_0 = arith.constant 0 : i32
    %c0_i32_1 = arith.constant 0 : i32
    return %c0_i32, %c0_i32_0 : i32, i32
  }
  func.func @transform_3(%arg0: i32) -> (i32, i32) {
    %c0_i32 = arith.constant 0 : i32
    %c0_i32_0 = arith.constant 0 : i32
    %c0_i32_1 = arith.constant 0 : i32
    return %c0_i32, %c0_i32_0 : i32, i32
  }
  func.func @transform_4(%arg0: i32) -> (i32, i32) {
    %c0_i32 = arith.constant 0 : i32
    %c0_i32_0 = arith.constant 0 : i32
    %c0_i32_1 = arith.constant 0 : i32
    return %c0_i32, %c0_i32_0 : i32, i32
  }
  func.func @transform_5(%arg0: i32) -> (i32, i32) {
    %c0_i32 = arith.constant 0 : i32
    %c0_i32_0 = arith.constant 0 : i32
    %c0_i32_1 = arith.constant 0 : i32
    return %c0_i32, %c0_i32_0 : i32, i32
  }
  func.func @transform_6(%arg0: i32) -> (i32, i32) {
    %c0_i32 = arith.constant 0 : i32
    %c0_i32_0 = arith.constant 0 : i32
    %c0_i32_1 = arith.constant 0 : i32
    return %c0_i32, %c0_i32_0 : i32, i32
  }
  func.func @transform_7(%arg0: i32) -> (i32, i32) {
    %c0_i32 = arith.constant 0 : i32
    %c0_i32_0 = arith.constant 0 : i32
    %c0_i32_1 = arith.constant 0 : i32
    return %c0_i32, %c0_i32_0 : i32, i32
  }
  func.func @transform_8(%arg0: i32) -> (i32, i32) {
    %c0_i32 = arith.constant 0 : i32
    %c0_i32_0 = arith.constant 0 : i32
    return %c0_i32, %arg0 : i32, i32
  }
}

</mosaic_0001>

<bundles_post_ra>
// kernel: tpu_custom_call.1
= control target key start
LH: loop header
LB: loop body
LE: loop exit
PB: predicated region body
PF: predicated region fallthrough
CT: control target
= control target key end

     0   :  { %s1721_s0 = inlined_call_operand.vmem [shape: f32[16,1000], index: 0, kind: input, shape index: {}]   ;;  %s1722_s1 = inlined_call_operand.hbm [shape: f32[16,1000], index: 1, kind: input, shape index: {}]   ;;  %s1723_s2 = inlined_call_operand.vmem [shape: f32[32,16], index: 2, kind: input, shape index: {}]   ;;  %s1724_s3 = inlined_call_operand.vmem [shape: f32[32,1], index: 3, kind: input, shape index: {}]   ;;  %s1725_s4 = inlined_call_operand.hbm [shape: f32[32,32], index: 4, kind: input, shape index: {}]   ;;  %s1726_s5 = inlined_call_operand.vmem [shape: f32[32,1], index: 5, kind: input, shape index: {}]   ;;  %s1727_s6 = inlined_call_operand.vmem [shape: f32[32,1], index: 6, kind: input, shape index: {}]   ;;  %s1728_s7 = inlined_call_operand.<no memory space> [shape: f32[1,1], index: 7, kind: input, shape index: {}]   ;;  %s1729_s8 = inlined_call_operand.hbm [shape: f32[1,1000], index: 8, kind: output, shape index: {}]  }
   0x1   :  { %1734 = sst [smem:[#allocation13_spill]] %s1721_s0  ;;  %v13_v0 = vstv %s1728_s7 }
   0x2   :  { %14 = vst [vmem:[#allocation2] sm:$0x1] %v13_v0 }
   0x3   :  { %15 = vsyncpa [#allocation5], 0 }
   0x4   :  { %17 = vsyncpa [#allocation5 + $0x1], 0 }
   0x5   :  { %18 = vsyncpa [#allocation8], 0 }
   0x6   :  { %19 = vsyncpa [#allocation6], 0 }
   0x7   :  { %21 = vsyncpa [#allocation6 + $0x1], 0  ;;  %s1455_s29 = smov 0   ;;  %s1457_s30 = smov 0  }
   0x8   :  { %s1459_s9 = smov 0   ;;  %s1461_s10 = smov 0  }
   0x9 LB: > { %s1476_s7 = sadd.s32 4294967295, %s1394_s10   ;;  %s1153_s11 = sadd.s32 4294967294, %s1394_s10   ;;  %s1394_s10 = sphi %s1461_s10, %s1750_s10   ;;  %s1390_s9 = sphi %s1459_s9, %s1749_s9   ;;  %s1386_s30 = sphi %s1457_s30, %s1748_s30   ;;  %s1382_s29 = sphi %s1455_s29, %s1747_s29  }
   0xa   : > { %s1480_s12 = sadd.s32 1, %s1394_s10   ;;  %s34_s13 = sadd.s32 1, %s1390_s9 }
   0xb   : > { %s31_s14 = ssub.s32 %s1394_s10, %s1480_s12  ;;  %p41_p0 = scmp.ne.s32.totalorder %s1390_s9, %s1386_s30 }
   0xc   : > { %p32_p1 = scmp.eq.s32.totalorder %s31_s14, 0  ;;  %p42_p2 = scmp.eq.s32.totalorder %s1394_s10, 0 }
   0xd   : > { %p73_p3 = scmp.ne.s32.totalorder %s1386_s30, %s1382_s29  ;;  %p1733_p4 = scmp.eq.s32.totalorder %s1476_s7, 0 }
   0xe   : > { %s1492_s15 = scalar_select %p32_p1, %s1390_s9, %s34_s13  }
   0xf   : > { %p1494_p5 = por %p42_p2, %p41_p0  ;;  %p1500_p6 = por %p1733_p4, %p73_p3 }
  0x10   : > { %p223_p7 = scmp.eq.s32.totalorder %s1476_s7, 1  ;;  %p229_p8 = scmp.eq.s32.totalorder %s1153_s11, 1 }
  0x11   : > { %s1736_s17 = scalar_select %p1500_p6, 1, 0 }
  0x12   : > { %p1154_p9 = scmp.ge.s32.totalorder %s1394_s10, 1  ;;  %p236_p10 = scmp.lt.s32.totalorder %s1394_s10, 3 }
  0x13   : > { %p1507_p11 = por %p223_p7, %p41_p0  ;;  %p1511_p12 = por %p229_p8, %p73_p3 }
  0x14   : > { %p1515_p13 = pnand %p1154_p9, %p236_p10  ;;  %s1396_s21 = smov [#allocation7]  }
  0x15   : > { %s1737_s18 = scalar_select %p1507_p11, 1, 0 }
  0x16   : > { %s1738_s19 = scalar_select %p1511_p12, 1, 0 }
  0x17   : > { %p1204_p1 = pneg %p1515_p13  ;;  %s254_s22 = sshll.u32 %s1396_s21, 4  ;;  %s255_s22 = int_to_ptr.vmem [resolvable:$true] %s254_s22 }
  0x18   : > { %s1285_s23 = scalar_lea.vmem %s255_s22, 512  ;;  %p1293_p8 = scmp.lt.s32.totalorder %s255_s22, %s255_s22 }
  0x19   : > { %p1205_p2 = pnand %p1204_p1, %p1733_p4  ;;  %p1286_p7 = scmp.ne.s32.totalorder %s255_s22, %s1285_s23 }
  0x1a   : > { %p1294_p6 = scmp.lt.s32.totalorder %s1285_s23, %s1285_s23 }
  0x1b   : > { %p1276_p0 = pneg %p1205_p2 }
  0x1c   : > { %p1295_p12 = por %p1294_p6, %p1293_p8 }
  0x1d   : > { %p1288_p11 = pnand %p1286_p7, %p1276_p0 }
  0x1f   : > { %p1289_p3 = pneg %p1288_p11 }
  0x21   : > { %p1296_p9 = pnand %p1295_p12, %p1289_p3 }
  0x23   : > { %1299 = shalt.err (!%p1296_p9)
}
  0x24   : > { %s1397_s24 = smov 128   ;;  %s1398_s25 = smov 8  }
  0x25   : > { %1207 = dma.hbm_to_vmem [thread:$0]  (!%p1205_p2), %s1725_s4, 512, %s255_s22, [#allocation8], %s1397_s24, %s1397_s24, %s1398_s25  }
  0x26   : > { %p1732_p10 = scmp.ge.s32.totalorder %s1394_s10, 2 }
  0x28   : > { %273 = sbr.rel (%p1732_p10) target bundleno = 85 (0x55), region = 40 }
  0x2d   : > { %276 = sbr.rel (!%p1494_p5) target bundleno = 59 (0x3b), region = 44  ;;  %s278_s28 = sand.u32 (%p1494_p5), 1, %s1390_s9  }
  0x2e   : > { %s1193_s11 = sshll.u32 (%p1494_p5), %s1394_s10, 5  ;;  %s1157_s13 = sshll.u32 (%p1494_p5), %s278_s28, 6 }
  0x2f   : > { %s1740_s0 = sld [smem:[#allocation13_spill]] (%p1494_p5)  ;;  %s280_s22 = scalar_lea.vmem (%p1494_p5), [#allocation3], %s1157_s13 }
  0x35   : > { %s283_s23 = scalar_lea.vmem %s1740_s0, %s1193_s11 }
  0x36   : > { %v296_v1 = vld [vmem:[%s283_s23] sm:$0xff]  ;;  %v298_v2 = vld [vmem:[%s283_s23 + $0x8] sm:$0xff]  ;;  %v300_v3 = vld [vmem:[%s283_s23 + $0x10] sm:$0xff] }
  0x37   : > { %297 = vst [vmem:[%s280_s22] sm:$0xff] %v296_v1  ;;  %299 = vst [vmem:[%s280_s22 + $0x8] sm:$0xff] %v298_v2  ;;  %v302_v4 = vld [vmem:[%s283_s23 + $0x18] sm:$0xff]  ;;  %v304_v5 = vld [vmem:[%s283_s23 + $0x40] sm:$0xff] }
  0x38   : > { %301 = vst [vmem:[%s280_s22 + $0x10] sm:$0xff] %v300_v3  ;;  %v306_v6 = vld [vmem:[%s283_s23 + $0x48] sm:$0xff]  ;;  %303 = vst [vmem:[%s280_s22 + $0x18] sm:$0xff] %v302_v4  ;;  %v308_v7 = vld [vmem:[%s283_s23 + $0x50] sm:$0xff] }
  0x39   : > { %305 = vst [vmem:[%s280_s22 + $0x20] sm:$0xff] %v304_v5  ;;  %307 = vst [vmem:[%s280_s22 + $0x28] sm:$0xff] %v306_v6  ;;  %v310_v8 = vld [vmem:[%s283_s23 + $0x58] sm:$0xff] }
  0x3a   : > { %309 = vst [vmem:[%s280_s22 + $0x30] sm:$0xff] %v308_v7  ;;  %311 = vst [vmem:[%s280_s22 + $0x38] sm:$0xff] %v310_v8 }
  0x3b PF: > { %s318_s24 = sand.u32 1, %s1390_s9   ;;  %s1194_s25 = sshll.u32 %s1394_s10, 9 }
  0x3c   : > { %s1160_s26 = sshll.u32 %s318_s24, 6  ;;  %s1541_s11 = scalar_lea.hbm %s1722_s1, %s1194_s25 }
  0x3d   : > { %s322_s13 = scalar_lea.vmem [#allocation4], %s1160_s26  ;;  %s1545_s21 = scalar_lea.sflag [#allocation5], %s318_s24 }
  0x3e   : > { %s329_s14 = sshll.u32 %s322_s13, 4  ;;  %s1300_s23 = scalar_lea.hbm %s1541_s11, 1024  ;;  %s1543_s14 = int_to_ptr.vmem [resolvable:$true] %s329_s14 }
  0x3f   : > { %p1301_p6 = scmp.ne.s32.totalorder %s1541_s11, %s1300_s23  ;;  %s1304_s27 = scalar_lea.hbm %s1722_s1, 2048 }
  0x40   : > { %p1305_p1 = scmp.lt.s32.totalorder %s1541_s11, %s1722_s1  ;;  %p1306_p2 = scmp.lt.s32.totalorder %s1304_s27, %s1300_s23 }
  0x41   : > { %p1302_p11 = pnand %p1301_p6, %p1494_p5 }
  0x42   : > { %p1307_p0 = por %p1306_p2, %p1305_p1 }
  0x43   : > { %p1303_p12 = pneg %p1302_p11 }
  0x45   : > { %p1308_p7 = pnand %p1307_p0, %p1303_p12 }
  0x47   : > { %1311 = shalt.err (!%p1308_p7)
}
  0x48   : > { %s1312_s24 = scalar_lea.vmem %s1543_s14, 1024  ;;  %s1399_s26 = smov [#allocation4]  }
  0x49   : > { %p1313_p3 = scmp.ne.s32.totalorder %s1543_s14, %s1312_s24  ;;  %s1316_s0 = sshll.u32 %s1399_s26, 4  ;;  %s1317_s0 = int_to_ptr.vmem [resolvable:$false] %s1316_s0 }
  0x4a   : > { %s1318_s13 = scalar_lea.vmem %s1317_s0, 2048  ;;  %p1319_p6 = scmp.lt.s32.totalorder %s1543_s14, %s1317_s0 }
  0x4b   : > { %p1314_p8 = pnand %p1313_p3, %p1494_p5  ;;  %p1320_p11 = scmp.lt.s32.totalorder %s1318_s13, %s1312_s24 }
  0x4d   : > { %p1315_p9 = pneg %p1314_p8  ;;  %p1321_p10 = por %p1320_p11, %p1319_p6 }
  0x4f   : > { %p1322_p4 = pnand %p1321_p10, %p1315_p9 }
  0x51   : > { %1325 = shalt.err (!%p1322_p4)
}
  0x52   : > { %s1400_s23 = smov 1024   ;;  %s1401_s22 = smov 512  }
  0x53   : > { %s1402_s27 = smov 32  }
  0x54   : > { %1198 = dma.hbm_to_vmem [thread:$0]  (%p1494_p5), %s1541_s11, 1024, %s1543_s14, %s1545_s21, %s1400_s23, %s1401_s22, %s1402_s27  }
  0x55 PF: > { %341 = sbr.rel (%p1515_p13) target bundleno = 605 (0x25d), region = 71  ;;  %s1571_s25 = sand.u32 (!%p1515_p13), 1, %s1386_s30  }
  0x56   : > { %s1164_s28 = sshll.u32 (!%p1515_p13), %s1571_s25, 6  ;;  %s351_s26 = scalar_lea.sflag (!%p1515_p13), [#allocation5], %s1571_s25 }
  0x57   : > { %s1574_s24 = scalar_lea.vmem (!%p1515_p13), [#allocation3], %s1164_s28  ;;  %s1577_s0 = scalar_lea.vmem (!%p1515_p13), [#allocation4], %s1164_s28 }
  0x58   : > { %p1741_p4 = scmp.ne.s32.totalorder (!%p1515_p13), %s1736_s17, 0 }
  0x5a   : > { %1369 = dma.done.wait (%p1741_p4), %s351_s26, 1024  }
  0x5b   : > { %1371 = vsyncadd (%p1741_p4), %s351_s26, 4294966272  ;;  %p1742_p5 = scmp.eq.s32.totalorder %s1476_s7, 0 }
  0x5d   : > { %1373 = dma.done.wait (%p1742_p5), [#allocation8], 512   ;;  %p1743_p13 = pmov %p1742_p5 }
  0x5e   : > { %v1403_v9 = vmov 0.0   ;;  %v1404_v10 = vmov 0   ;;  %v403_v11 = vld [vmem:[%s1574_s24 + $0x28] sm:$0xff]  ;;  %v405_v13 = vld [vmem:[%s1574_s24 + $0x38] sm:$0xff]  ;;  %v402_v16 = vld [vmem:[%s1574_s24 + $0x20] sm:$0xff]  ;;  %vm450_vm0 = vcmask 130048  }
  0x5f   : > { %1375 = vsyncadd (%p1743_p13), [#allocation8], 4294966784  ;;  %527 = vmatprep.mubr.f32.mxu0 %v1403_v9  ;;  %616 = vmatprep.mubr.f32.mxu1 %v1403_v9  ;;  %v411_v12 = vld [vmem:[%s1577_s0 + $0x28] sm:$0xff]  ;;  %v413_v15 = vld [vmem:[%s1577_s0 + $0x38] sm:$0xff]  ;;  %vm685_vm1 = vcmask 261120   ;;  %s1167_s14 = sshll.u32 %s1571_s25, 2 }
  0x60   : > { %1256 = vset.pattern.permute.xlu0 %v1404_v10  ;;  %1257 = vset.pattern.permute.xlu1 %v1404_v10  ;;  %v419_v14 = vmul.f32 %v411_v12, %v403_v11  ;;  %v410_v17 = vld [vmem:[%s1577_s0 + $0x20] sm:$0xff]  ;;  %v421_v18 = vmul.f32 %v413_v15, %v405_v13  ;;  %v404_v20 = vld [vmem:[%s1574_s24 + $0x30] sm:$0xff]  ;;  %v399_v22 = vld [vmem:[%s1574_s24 + $0x8] sm:$0xff]  ;;  %s1195_s21 = sshll.u32 %s1476_s7, 6  ;;  %s394_s13 = scalar_lea.vmem [#allocation9], %s1167_s14 }
  0x61   : > { %v418_v19 = vmul.f32 %v410_v17, %v402_v16  ;;  %v412_v21 = vld [vmem:[%s1577_s0 + $0x30] sm:$0xff]  ;;  %v407_v24 = vld [vmem:[%s1577_s0 + $0x8] sm:$0xff]  ;;  %v401_v25 = vld [vmem:[%s1574_s24 + $0x18] sm:$0xff]  ;;  %s1055_s23 = sshll.u32 %s394_s13, 4  ;;  %s1053_s28 = scalar_lea.hbm %s1729_s8, %s1195_s21  ;;  %s1056_s23 = int_to_ptr.vmem [resolvable:$true] %s1055_s23 }
  0x62   : > { %491 = vmatprep.subr.mxu0 %v419_v14  ;;  %v420_v23 = vmul.f32 %v412_v21, %v404_v20  ;;  %v409_v26 = vld [vmem:[%s1577_s0 + $0x18] sm:$0xff]  ;;  %580 = vmatprep.subr.mxu1 %v421_v18  ;;  %v415_v27 = vmul.f32 %v407_v24, %v399_v22  ;;  %v398_v29 = vld [vmem:[%s1574_s24] sm:$0xff]  ;;  %v400_v31 = vld [vmem:[%s1574_s24 + $0x10] sm:$0xff]  ;;  %s1041_s24 = scalar_lea.sflag [#allocation6], %s1571_s25  ;;  %s1326_s26 = scalar_lea.vmem %s1056_s23, 64 }
  0x63   : > { %492 = vmatpush1.msra.mxu0 %v418_v19  ;;  %v417_v28 = vmul.f32 %v409_v26, %v401_v25  ;;  %v406_v30 = vld [vmem:[%s1577_s0] sm:$0xff]  ;;  %v408_v33 = vld [vmem:[%s1577_s0 + $0x10] sm:$0xff]  ;;  %v896_v51 = vld [vmem:[#allocation2] sm:$0x1]  ;;  %p1327_p10 = scmp.ne.s32.totalorder %s1056_s23, %s1326_s26  ;;  %p1744_p12 = scmp.ne.s32.totalorder %s1737_s18, 0 }
  0x64   : > { %581 = vmatpush1.msra.mxu1 %v420_v23  ;;  %v414_v32 = vmul.f32 %v406_v30, %v398_v29  ;;  %v422_v34 = vld [vmem:[%s1723_s2] sm:$0xff]  ;;  %493 = vmatprep.subr.mxu0 %v415_v27  ;;  %v416_v35 = vmul.f32 %v408_v33, %v400_v31  ;;  %v429_v36 = vld [vmem:[%s1724_s3 + $0x18] sm:$0xff]  ;;  %v427_v37 = vld [vmem:[%s1724_s3 + $0x8] sm:$0xff]  ;;  %s1406_s0 = smov [#allocation9]  }
  0x65   : > { %582 = vmatprep.subr.mxu1 %v417_v28  ;;  %447 = vperm.xlu0 %1256, %v429_v36   ;;  %v428_v38 = vld [vmem:[%s1724_s3 + $0x10] sm:$0xff]  ;;  %v423_v39 = vld [vmem:[%s1723_s2 + $0x8] sm:$0xff]  ;;  %v426_v40 = vld [vmem:[%s1724_s3] sm:$0xff]  ;;  %p1328_p1 = pnand %p1327_p10, %p1744_p12  ;;  %s1330_s7 = sshll.u32 %s1406_s0, 4  ;;  %s1331_s7 = int_to_ptr.vmem [resolvable:$false] %s1330_s7 }
  0x66   : > { %494 = vmatpush1.msra.mxu0 %v414_v32  ;;  %583 = vmatpush1.msra.mxu1 %v416_v35  ;;  %v661_v41 = vld [vmem:[%s1726_s5] sm:$0xff]  ;;  %v424_v42 = vld [vmem:[%s1723_s2 + $0x10] sm:$0xff]  ;;  %v662_v43 = vld [vmem:[%s1726_s5 + $0x8] sm:$0xff]  ;;  %s1332_s16 = scalar_lea.vmem %s1331_s7, 128  ;;  %p1333_p0 = scmp.lt.s32.totalorder %s1056_s23, %s1331_s7 }
  0x67   : > { %1168 = vmatmul.mubr.msk.f32.vlgmr.msra.gmra.mxu0 %vm450_vm0, %v422_v34  ;;  %1172 = vmatmul.mubr.msk.f32.vlgmr.msra.gmra.mxu1 %vm450_vm0, %v422_v34  ;;  %v663_v44 = vld [vmem:[%s1726_s5 + $0x10] sm:$0xff]  ;;  %v425_v45 = vld [vmem:[%s1723_s2 + $0x18] sm:$0xff]  ;;  %v892_v47 = vld [vmem:[%s1727_s6] sm:$0xff]  ;;  %p1329_p2 = pneg %p1328_p1  ;;  %p1334_p7 = scmp.lt.s32.totalorder %s1332_s16, %s1326_s26 }
  0x68   : > { %533 = vmatprep.mubr.f32.mxu0 %v1403_v9  ;;  %622 = vmatprep.mubr.f32.mxu1 %v1403_v9  ;;  %v664_v46 = vld [vmem:[%s1726_s5 + $0x18] sm:$0xff]  ;;  %v893_v48 = vld [vmem:[%s1727_s6 + $0x8] sm:$0xff]  ;;  %v894_v49 = vld [vmem:[%s1727_s6 + $0x10] sm:$0xff] }
  0x69   : > { %437 = vperm.xlu1 %1257, %v427_v37   ;;  %442 = vperm.xlu0 %1256, %v428_v38   ;;  %v895_v50 = vld [vmem:[%s1727_s6 + $0x18] sm:$0xff]  ;;  %p1335_p3 = por %p1334_p7, %p1333_p0 }
  0x6b   : > { %1169 = vmatmul.mubr.msk.f32.gmra.mxu0 %vm450_vm0, %v423_v39  ;;  %1173 = vmatmul.mubr.msk.f32.gmra.mxu1 %vm450_vm0, %v423_v39  ;;  %p1336_p8 = pnand %p1335_p3, %p1329_p2 }
  0x6c   : > { %539 = vmatprep.mubr.f32.mxu0 %v1403_v9  ;;  %628 = vmatprep.mubr.f32.mxu1 %v1403_v9 }
  0x6d   : > { %432 = vperm.xlu1 %1257, %v426_v40   ;;  %667 = vperm.xlu0 %1256, %v661_v41   ;;  %v657_v40 = vld [vmem:[#allocation7] sm:$0xff] }
  0x6f   : > { %1170 = vmatmul.mubr.msk.f32.gmra.mxu0 %vm450_vm0, %v424_v42  ;;  %1174 = vmatmul.mubr.msk.f32.gmra.mxu1 %vm450_vm0, %v424_v42  ;;  %v658_v42 = vld [vmem:[#allocation7 + $0x8] sm:$0xff] }
  0x70   : > { %545 = vmatprep.mubr.f32.mxu0 %v1403_v9  ;;  %634 = vmatprep.mubr.f32.mxu1 %v1403_v9 }
  0x71   : > { %672 = vperm.xlu1 %1257, %v662_v43   ;;  %677 = vperm.xlu0 %1256, %v663_v44   ;;  %v659_v43 = vld [vmem:[#allocation7 + $0x10] sm:$0xff]  ;;  %v660_v44 = vld [vmem:[#allocation7 + $0x18] sm:$0xff] }
  0x73   : > { %1171 = vmatmul.mubr.msk.f32.gmra.mxu0 %vm450_vm0, %v425_v45  ;;  %1175 = vmatmul.mubr.msk.f32.gmra.mxu1 %vm450_vm0, %v425_v45 }
  0x74   : > { %762 = vmatprep.mubr.f32.mxu0 %v1403_v9  ;;  %851 = vmatprep.mubr.f32.mxu1 %v1403_v9 }
  0x75   : > { %682 = vperm.xlu1 %1257, %v664_v46   ;;  %899 = vperm.xlu0 %1256, %v892_v47  }
  0x79   : > { %904 = vperm.xlu1 %1257, %v893_v48   ;;  %909 = vperm.xlu0 %1256, %v894_v49  }
  0x7d   : > { %914 = vperm.xlu1 %1257, %v895_v50   ;;  %971 = vperm.xlu0 %1256, %v896_v51  }
  0xe0   : > { %v448_v60 = vpop.permute.xlu0 %447 }
  0xe4   : > { %v438_v0 = vpop.permute.xlu1 %437  ;;  %v443_v4 = vpop.permute.xlu0 %442 }
  0xe8   : > { %v433_v15 = vpop.permute.xlu1 %432  ;;  %v668_v45 = vpop.permute.xlu0 %667 }
  0xec   : > { %v673_v46 = vpop.permute.xlu1 %672  ;;  %v678_v47 = vpop.permute.xlu0 %677 }
 0x127   : > { %v529_v52 = vpop.f32.mrf.mxu0  ;;  %v618_v53 = vpop.f32.mrf.mxu1 }
 0x128   : > { %v530_v27 = vadd.f32 %v529_v52, %v433_v15  ;;  %v619_v31 = vadd.f32 %v618_v53, %v433_v15 }
 0x129   : > { %v531_v54 = vpop.f32.mrf.mxu0  ;;  %v620_v55 = vpop.f32.mrf.mxu1 }
 0x12a   : > { %v532_v23 = vadd.f32 %v531_v54, %v433_v15  ;;  %v621_v28 = vadd.f32 %v620_v55, %v433_v15  ;;  %v641_v38 = vmax.f32 %v530_v27, 0.0  ;;  %v643_v41 = vmax.f32 %v619_v31, 0.0  ;;  %v683_v55 = vpop.permute.xlu1 %682 }
 0x12b   : > { %v535_v56 = vpop.f32.mrf.mxu0  ;;  %v624_v57 = vpop.f32.mrf.mxu1 }
 0x12c   : > { %v536_v19 = vadd.f32 %v535_v56, %v438_v0  ;;  %v625_v24 = vadd.f32 %v624_v57, %v438_v0  ;;  %v642_v36 = vmax.f32 %v532_v23, 0.0  ;;  %v644_v39 = vmax.f32 %v621_v28, 0.0 }
 0x12d   : > { %v537_v58 = vpop.f32.mrf.mxu0  ;;  %v626_v59 = vpop.f32.mrf.mxu1 }
 0x12e   : > { %v538_v16 = vadd.f32 %v537_v58, %v438_v0  ;;  %v627_v20 = vadd.f32 %v626_v59, %v438_v0  ;;  %v645_v34 = vmax.f32 %v536_v19, 0.0  ;;  %v647_v37 = vmax.f32 %v625_v24, 0.0 }
 0x12f   : > { %v541_v61 = vpop.f32.mrf.mxu0  ;;  %v630_v62 = vpop.f32.mrf.mxu1 }
 0x130   : > { %v542_v12 = vadd.f32 %v541_v61, %v443_v4  ;;  %v631_v17 = vadd.f32 %v630_v62, %v443_v4  ;;  %v646_v32 = vmax.f32 %v538_v16, 0.0  ;;  %v648_v35 = vmax.f32 %v627_v20, 0.0 }
 0x131   : > { %v543_v63 = vpop.f32.mrf.mxu0  ;;  %v632_v1 = vpop.f32.mrf.mxu1 }
 0x132   : > { %v544_v7 = vadd.f32 %v543_v63, %v443_v4  ;;  %v633_v13 = vadd.f32 %v632_v1, %v443_v4  ;;  %v649_v29 = vmax.f32 %v542_v12, 0.0  ;;  %v651_v33 = vmax.f32 %v631_v17, 0.0  ;;  %v905_v12 = vpop.permute.xlu1 %904 }
 0x133   : > { %v547_v2 = vpop.f32.mrf.mxu0  ;;  %v636_v3 = vpop.f32.mrf.mxu1 }
 0x134   : > { %v548_v5 = vadd.f32 %v547_v2, %v448_v60  ;;  %v637_v8 = vadd.f32 %v636_v3, %v448_v60  ;;  %v650_v25 = vmax.f32 %v544_v7, 0.0  ;;  %v652_v30 = vmax.f32 %v633_v13, 0.0 }
 0x135   : > { %v549_v6 = vpop.f32.mrf.mxu0  ;;  %v638_v11 = vpop.f32.mrf.mxu1 }
 0x136   : > { %v550_v10 = vadd.f32 %v549_v6, %v448_v60  ;;  %v639_v14 = vadd.f32 %v638_v11, %v448_v60  ;;  %v653_v21 = vmax.f32 %v548_v5, 0.0  ;;  %v655_v26 = vmax.f32 %v637_v8, 0.0 }
 0x138   : > { %v654_v18 = vmax.f32 %v550_v10, 0.0  ;;  %v656_v22 = vmax.f32 %v639_v14, 0.0 }
 0x13a   : > { %722 = vmatprep.subr.mxu0 %v654_v18  ;;  %811 = vmatprep.subr.mxu1 %v656_v22 }
 0x13b   : > { %723 = vmatpush1.msra.mxu0 %v653_v21  ;;  %812 = vmatpush1.msra.mxu1 %v655_v26 }
 0x13c   : > { %724 = vmatprep.subr.mxu0 %v650_v25  ;;  %813 = vmatprep.subr.mxu1 %v652_v30 }
 0x13d   : > { %725 = vmatpush1.msra.mxu0 %v649_v29  ;;  %814 = vmatpush1.msra.mxu1 %v651_v33 }
 0x13e   : > { %726 = vmatprep.subr.mxu0 %v646_v32  ;;  %815 = vmatprep.subr.mxu1 %v648_v35 }
 0x13f   : > { %727 = vmatpush1.msra.mxu0 %v645_v34  ;;  %816 = vmatpush1.msra.mxu1 %v647_v37 }
 0x140   : > { %728 = vmatprep.subr.mxu0 %v642_v36  ;;  %817 = vmatprep.subr.mxu1 %v644_v39 }
 0x141   : > { %729 = vmatpush1.msra.mxu0 %v641_v38  ;;  %818 = vmatpush1.msra.mxu1 %v643_v41 }
 0x142   : > { %1176 = vmatmul.mubr.msk.f32.vlgmr.msra.gmra.mxu0 %vm685_vm1, %v657_v40  ;;  %1180 = vmatmul.mubr.msk.f32.vlgmr.msra.gmra.mxu1 %vm685_vm1, %v657_v40 }
 0x143   : > { %768 = vmatprep.mubr.f32.mxu0 %v1403_v9  ;;  %857 = vmatprep.mubr.f32.mxu1 %v1403_v9 }
 0x146   : > { %1177 = vmatmul.mubr.msk.f32.gmra.mxu0 %vm685_vm1, %v658_v42  ;;  %1181 = vmatmul.mubr.msk.f32.gmra.mxu1 %vm685_vm1, %v658_v42 }
 0x147   : > { %774 = vmatprep.mubr.f32.mxu0 %v1403_v9  ;;  %863 = vmatprep.mubr.f32.mxu1 %v1403_v9 }
 0x14a   : > { %1178 = vmatmul.mubr.msk.f32.gmra.mxu0 %vm685_vm1, %v659_v43  ;;  %1182 = vmatmul.mubr.msk.f32.gmra.mxu1 %vm685_vm1, %v659_v43 }
 0x14b   : > { %780 = vmatprep.mubr.f32.mxu0 %v1403_v9  ;;  %869 = vmatprep.mubr.f32.mxu1 %v1403_v9  ;;  %v900_v9 = vpop.permute.xlu0 %899 }
 0x14e   : > { %1179 = vmatmul.mubr.msk.f32.gmra.mxu0 %vm685_vm1, %v660_v44  ;;  %1183 = vmatmul.mubr.msk.f32.gmra.mxu1 %vm685_vm1, %v660_v44  ;;  %v915_v44 = vpop.permute.xlu1 %914 }
 0x14f   : > { %v910_v23 = vpop.permute.xlu0 %909 }
 0x202   : > { %v764_v48 = vpop.f32.mrf.mxu0  ;;  %v853_v49 = vpop.f32.mrf.mxu1 }
 0x203   : > { %v765_v50 = vadd.f32 %v764_v48, %v668_v45  ;;  %v854_v51 = vadd.f32 %v853_v49, %v668_v45 }
 0x204   : > { %v766_v52 = vpop.f32.mrf.mxu0  ;;  %v855_v54 = vpop.f32.mrf.mxu1 }
 0x205   : > { %v767_v53 = vadd.f32 %v766_v52, %v668_v45  ;;  %v856_v56 = vadd.f32 %v855_v54, %v668_v45  ;;  %v876_v60 = vmax.f32 %v765_v50, 0.0  ;;  %v878_v61 = vmax.f32 %v854_v51, 0.0 }
 0x206   : > { %v770_v57 = vpop.f32.mrf.mxu0  ;;  %v859_v59 = vpop.f32.mrf.mxu1 }
 0x207   : > { %v771_v58 = vadd.f32 %v770_v57, %v673_v46  ;;  %v860_v62 = vadd.f32 %v859_v59, %v673_v46  ;;  %v877_v0 = vmax.f32 %v767_v53, 0.0  ;;  %v879_v4 = vmax.f32 %v856_v56, 0.0 }
 0x208   : > { %v772_v63 = vpop.f32.mrf.mxu0  ;;  %v861_v3 = vpop.f32.mrf.mxu1  ;;  %v917_v13 = vmul.f32 %v900_v9, %v876_v60  ;;  %v919_v14 = vmul.f32 %v900_v9, %v878_v61 }
 0x209   : > { %v880_v1 = vmax.f32 %v771_v58, 0.0  ;;  %v773_v2 = vadd.f32 %v772_v63, %v673_v46  ;;  %v882_v5 = vmax.f32 %v860_v62, 0.0  ;;  %v862_v6 = vadd.f32 %v861_v3, %v673_v46 }
 0x20a   : > { %v776_v7 = vpop.f32.mrf.mxu0  ;;  %v865_v11 = vpop.f32.mrf.mxu1  ;;  %v918_v18 = vmul.f32 %v900_v9, %v877_v0  ;;  %v920_v24 = vmul.f32 %v900_v9, %v879_v4  ;;  %v974_v58 = vlaneseq }
 0x20b   : > { %v881_v8 = vmax.f32 %v773_v2, 0.0  ;;  %v777_v10 = vadd.f32 %v776_v7, %v678_v47  ;;  %v883_v15 = vmax.f32 %v862_v6, 0.0  ;;  %v866_v16 = vadd.f32 %v865_v11, %v678_v47 }
 0x20c   : > { %v778_v17 = vpop.f32.mrf.mxu0  ;;  %v921_v19 = vmul.f32 %v905_v12, %v880_v1  ;;  %v867_v22 = vpop.f32.mrf.mxu1  ;;  %v923_v25 = vmul.f32 %v905_v12, %v882_v5  ;;  %vm1037_vm2 = vcmp.lt.s32.totalorder %v974_v58, 512 }
 0x20d   : > { %v884_v20 = vmax.f32 %v777_v10, 0.0  ;;  %v779_v21 = vadd.f32 %v778_v17, %v678_v47  ;;  %v886_v26 = vmax.f32 %v866_v16, 0.0  ;;  %v868_v27 = vadd.f32 %v867_v22, %v678_v47  ;;  %v972_v16 = vpop.permute.xlu0 %971 }
 0x20e   : > { %v782_v28 = vpop.f32.mrf.mxu0  ;;  %v922_v29 = vmul.f32 %v905_v12, %v881_v8  ;;  %v871_v33 = vpop.f32.mrf.mxu1  ;;  %v924_v34 = vmul.f32 %v905_v12, %v883_v15  ;;  %v933_v39 = vadd.f32 %v921_v19, %v917_v13  ;;  %v951_v45 = vadd.f32 %v923_v25, %v919_v14 }
 0x20f   : > { %v925_v30 = vmul.f32 %v910_v23, %v884_v20  ;;  %v885_v31 = vmax.f32 %v779_v21, 0.0  ;;  %v783_v32 = vadd.f32 %v782_v28, %v683_v55  ;;  %v927_v35 = vmul.f32 %v910_v23, %v886_v26 }
 0x210   : > { %v887_v36 = vmax.f32 %v868_v27, 0.0  ;;  %v872_v37 = vadd.f32 %v871_v33, %v683_v55  ;;  %v784_v38 = vpop.f32.mrf.mxu0  ;;  %v873_v43 = vpop.f32.mrf.mxu1  ;;  %v942_v49 = vadd.f32 %v922_v29, %v918_v18  ;;  %v960_v53 = vadd.f32 %v924_v34, %v920_v24 }
 0x211   : > { %v926_v40 = vmul.f32 %v910_v23, %v885_v31  ;;  %v888_v41 = vmax.f32 %v783_v32, 0.0  ;;  %v785_v42 = vadd.f32 %v784_v38, %v683_v55  ;;  %v874_v48 = vadd.f32 %v873_v43, %v683_v55 }
 0x212   : > { %v928_v46 = vmul.f32 %v910_v23, %v887_v36  ;;  %v890_v47 = vmax.f32 %v872_v37, 0.0  ;;  %v934_v50 = vadd.f32 %v933_v39, %v925_v30  ;;  %v952_v54 = vadd.f32 %v951_v45, %v927_v35 }
 0x213   : > { %v929_v51 = vmul.f32 %v915_v44, %v888_v41  ;;  %v889_v52 = vmax.f32 %v785_v42, 0.0  ;;  %v891_v57 = vmax.f32 %v874_v48, 0.0  ;;  %v943_v59 = vadd.f32 %v942_v49, %v926_v40 }
 0x214   : > { %v931_v56 = vmul.f32 %v915_v44, %v890_v47  ;;  %v961_v61 = vadd.f32 %v960_v53, %v928_v46  ;;  %v975_v55 = vshrl.u32 %v974_v58, 7  ;;  %v1405_v46 = vmov 1966171168  }
 0x215   : > { %v935_v9 = vadd.f32 %v934_v50, %v929_v51  ;;  %v930_v60 = vmul.f32 %v915_v44, %v889_v52  ;;  %v932_v63 = vmul.f32 %v915_v44, %v891_v57  ;;  %v1013_v47 = vunpack.c.l.s4 %v1405_v46 }
 0x216   : > { %v953_v62 = vadd.f32 %v952_v54, %v931_v56  ;;  %v976_v13 = vsub.s32 0, %v975_v55 }
 0x217   : > { %v936_v0 = vrot.slane %v935_v9, 4  ;;  %v944_v1 = vadd.f32 %v943_v59, %v930_v60  ;;  %v962_v3 = vadd.f32 %v961_v61, %v932_v63  ;;  %v1014_v48 = vunpack.c.0.s8 %v1013_v47 }
 0x218   : > { %v954_v2 = vrot.slane %v953_v62, 4  ;;  %v977_v23 = vrot.slane %v972_v16, %v976_v13 }
 0x219   : > { %v937_v4 = vadd.f32 %v936_v0, %v935_v9  ;;  %v945_v5 = vrot.slane %v944_v1, 4  ;;  %v963_v7 = vrot.slane %v962_v3, 4  ;;  %v1017_v51 = vsub.s32 %v1014_v48, %v975_v55 }
 0x21a   : > { %v955_v6 = vadd.f32 %v954_v2, %v953_v62 }
 0x21b   : > { %v938_v8 = vrot.slane %v937_v4, 2  ;;  %v946_v10 = vadd.f32 %v945_v5, %v944_v1  ;;  %v964_v12 = vadd.f32 %v963_v7, %v962_v3 }
 0x21c   : > { %v956_v11 = vrot.slane %v955_v6, 2 }
 0x21d   : > { %v939_v14 = vadd.f32 %v938_v8, %v937_v4  ;;  %v947_v15 = vrot.slane %v946_v10, 2  ;;  %v965_v18 = vrot.slane %v964_v12, 2 }
 0x21e   : > { %v957_v17 = vadd.f32 %v956_v11, %v955_v6 }
 0x21f   : > { %v940_v19 = vrot.slane %v939_v14, 1  ;;  %v948_v20 = vadd.f32 %v947_v15, %v946_v10  ;;  %v966_v22 = vadd.f32 %v965_v18, %v964_v12 }
 0x220   : > { %v958_v21 = vrot.slane %v957_v17, 1 }
 0x221   : > { %v941_v24 = vadd.f32 %v940_v19, %v939_v14  ;;  %v949_v25 = vrot.slane %v948_v20, 1  ;;  %v967_v27 = vrot.slane %v966_v22, 1 }
 0x222   : > { %v959_v26 = vadd.f32 %v958_v21, %v957_v17 }
 0x223   : > { %v978_v28 = vadd.f32 %v977_v23, %v941_v24  ;;  %v950_v29 = vadd.f32 %v949_v25, %v948_v20  ;;  %v968_v31 = vadd.f32 %v967_v27, %v966_v22 }
 0x224   : > { %v980_v30 = vadd.f32 %v977_v23, %v959_v26 }
 0x225   : > { %v1184_v32 = vmul.f32 -1.442695, %v978_v28  ;;  %v979_v33 = vadd.f32 %v977_v23, %v950_v29  ;;  %v981_v35 = vadd.f32 %v977_v23, %v968_v31 }
 0x226   : > { %v1186_v34 = vmul.f32 -1.442695, %v980_v30 }
 0x227   : > { %1258 = vpow2.f32 %v1184_v32  ;;  %v1185_v36 = vmul.f32 -1.442695, %v979_v33  ;;  %v1187_v37 = vmul.f32 -1.442695, %v981_v35 }
 0x228   : > { %1260 = vpow2.f32 %v1186_v34 }
 0x229   : > { %1262 = vpow2.f32 %v1185_v36 }
 0x22a   : > { %1264 = vpow2.f32 %v1187_v37 }
 0x234   : > { %v1259_v38 = vpop.eup %1258 }
 0x235   : > { %v1261_v39 = vpop.eup %1260  ;;  %v994_v40 = vadd.f32 1.0, %v1259_v38 }
 0x236   : > { %v1263_v41 = vpop.eup %1262  ;;  %v996_v42 = vadd.f32 1.0, %v1261_v39 }
 0x237   : > { %v1265_v43 = vpop.eup %1264  ;;  %1266 = vrcp.f32 %v994_v40  ;;  %v995_v44 = vadd.f32 1.0, %v1263_v41 }
 0x238   : > { %1268 = vrcp.f32 %v996_v42  ;;  %v997_v45 = vadd.f32 1.0, %v1265_v43 }
 0x239   : > { %1270 = vrcp.f32 %v995_v44 }
 0x23a   : > { %1272 = vrcp.f32 %v997_v45 }
 0x244   : > { %v1267_v49 = vpop.eup %1266 }
 0x245   : > { %v1269_v50 = vpop.eup %1268 }
 0x246   : > { %v1271_v52 = vpop.eup %1270 }
 0x247   : > { %v1273_v53 = vpop.eup %1272  ;;  %v1010_v54 = vcombine.low %v1267_v49, %v1271_v52 }
 0x248   : > { %v1011_v56 = vcombine.low %v1269_v50, %v1273_v53 }
 0x249   : > { %v1018_v57 = vrot.slane %v1010_v54, %v1017_v51 }
 0x24a   : > { %v1025_v59 = vrot.slane %v1011_v56, %v1017_v51 }
 0x24c   : > { %v1026_v9 = vcombine.low %v1018_v57, %v1025_v59 }
 0x24e   : > { %v1033_v60 = vrot.slane %v1026_v9, %v1017_v51 }
 0x250   : > { %1039 = vst.msk [vmem:[%s394_s13] sm:$0xf] %vm1037_vm2, %v1033_v60 }
 0x251   : > { %1339 = shalt.err (!%p1336_p8)
}
 0x252   : > { %s1340_s17 = scalar_lea.hbm %s1053_s28, 64  ;;  %s1344_s11 = scalar_lea.hbm %s1729_s8, 128 }
 0x253   : > { %p1341_p9 = scmp.ne.s32.totalorder %s1053_s28, %s1340_s17  ;;  %p1345_p4 = scmp.lt.s32.totalorder %s1053_s28, %s1729_s8 }
 0x254   : > { %p1346_p5 = scmp.lt.s32.totalorder %s1344_s11, %s1340_s17 }
 0x255   : > { %p1342_p6 = pnand %p1341_p9, %p1744_p12 }
 0x256   : > { %p1347_p13 = por %p1346_p5, %p1345_p4 }
 0x257   : > { %p1343_p11 = pneg %p1342_p6 }
 0x259   : > { %p1348_p10 = pnand %p1347_p13, %p1343_p11 }
 0x25b   : > { %1351 = shalt.err (!%p1348_p10)
}
 0x25c   : > { %1202 = dma.vmem_to_hbm [thread:$0]  (%p1744_p12), %s1056_s23, 64, %s1053_s28, %s1041_s24  }
 0x25d PF: > { %s1067_s13 = sand.u32 1, %s1382_s29   ;;  %p1745_p1 = scmp.ne.s32.totalorder %s1738_s19, 0 }
 0x25e   : > { %p1746_p2 = scmp.ge.s32.totalorder %s1394_s10, 2  ;;  %s1068_s22 = scalar_lea.sflag [#allocation6], %s1067_s13 }
 0x260   : > { %p1209_p0 = pnand %p1746_p2, %p1745_p1 }
 0x262   : > { %p1210_p7 = pneg %p1209_p0 }
 0x264   : > { %1377 = dma.done.wait (%p1210_p7), %s1068_s22, 64  }
 0x265   : > { %1379 = vsyncadd (%p1210_p7), %s1068_s22, 4294967232  ;;  %p24_p3 = scmp.ge.s32.totalorder %s1480_s12, 4   ;;  %s1747_s29 = smov %s1386_s30 }
 0x266   : > { %s1748_s30 = smov %s1390_s9  ;;  %s1749_s9 = smov %s1492_s15 }
 0x267   : > { %s1750_s10 = smov %s1480_s12  ;;  %26 = sbr.rel (!%p24_p3) target bundleno = 9 (0x9), region = 132 }
 0x26c   :  { %1073 = vsyncpa [#allocation5], 1 }
 0x26d   :  { %1075 = vsyncpa [#allocation5 + $0x1], 1 }
 0x26e   :  { %1076 = vsyncpa [#allocation8], 1 }
 0x26f   :  { %1077 = vsyncpa [#allocation6], 1 }
 0x270   :  { %1079 = vsyncpa [#allocation6 + $0x1], 1 }

</bundles_post_ra>
